<compile_context>
chip_gen: v7x
topology: tpu7x:2x2x1
jax: 0.10.0
libtpu: 0.0.40
codegen_flags: <defaults>
</compile_context>

<pallas_src>
import functools

import jax
import jax.numpy as jnp
from jax.experimental import pallas as pl
from jax.experimental.pallas import tpu as pltpu


def _ls_ce_kernel(pred_ref, label_ref, out_ref, *, smoothing, n_total, c_total):
    """Accumulates the smoothed-NLL partial sum for one (batch, class) tile."""
    i = pl.program_id(0)          # batch-tile index ("parallel")
    j = pl.program_id(1)          # class-tile index ("arbitrary", reduction)

    @pl.when(j == 0)
    def _():
        out_ref[...] = jnp.zeros_like(out_ref)

    pred = pred_ref[...].astype(jnp.float32)               # (tile_n, tile_c)
    lbl = label_ref[...]                                     # (tile_n, 1) int32
    tile_n, tile_c = pred.shape

    # Validity masks for tail tiles (batch / class tails are OOB-padded blocks).
    row_idx = jax.lax.broadcasted_iota(jnp.int32, (tile_n, 1), 0)
    row_valid = (i * tile_n + row_idx) < n_total              # (tile_n, 1)
    col_idx = jax.lax.broadcasted_iota(jnp.int32, (tile_n, tile_c), 1)
    global_col = j * tile_c + col_idx                         # (tile_n, tile_c)
    valid = jnp.logical_and(row_valid, global_col < c_total)

    # TODO(synk): like the PyTorch module, this takes log of the given
    # probabilities directly; fuse log-softmax here if inputs can underflow to 0.
    neg_logp = jnp.where(valid, -jnp.log(pred), 0.0)

    one_hot = global_col == lbl                               # bool (tile_n, tile_c)
    w_hot = 1.0 - smoothing + smoothing / c_total
    w_uni = smoothing / c_total
    smoothed = jnp.where(one_hot, w_hot, w_uni)

    # Single full reduce per tile; masked (invalid) elements contribute 0.
    out_ref[...] += jnp.sum(neg_logp * smoothed)


def _vmem_capacity_bytes():
    try:
        return int(pltpu.get_tpu_info().vmem_capacity_bytes)
    except Exception:
        return 64 * 1024 * 1024   # conservative fallback (v7x per-TC VMEM)


def _round_up(x, m):
    return ((x + m - 1) // m) * m


def _choose_tiles(n, c, pred_itemsize):
    """Pick (tile_n, tile_c, vmem_limit_bytes) from the VMEM budget."""
    vmem_cap = _vmem_capacity_bytes()
    budget = vmem_cap // 2                      # headroom for regalloc/scratch

    # Class tile: full C when modest, else a lane-aligned chunk (reduction axis).
    tile_c = c if c <= 4096 else 2048
    c_lane_bytes = _round_up(tile_c, 128) * pred_itemsize

    # Batch tile from the double-buffered footprint:
    #   2 x pred block + 2 x (tile_n, 1)->lane-padded int32 label block.
    per_row = 2 * c_lane_bytes + 2 * 128 * 4
    tile_n = budget // per_row
    n_floor8 = max(8, (n // 8) * 8)             # don't exceed the array extent
    tile_n = max(8, min((tile_n // 8) * 8, 1024, n_floor8))

    footprint = tile_n * per_row + (1 << 20)
    vmem_limit = max(32 << 20, footprint + (8 << 20))
    vmem_limit = min(vmem_limit, int(vmem_cap * 0.9))
    return tile_n, tile_c, int(vmem_limit)


def label_smoothing_cross_entropy_loss(softmax_pred, label, smoothing=0.0):
    """softmax_pred: (N, C) probabilities (any float dtype); label: (N,) int.

    Returns the scalar label-smoothed NLL (mean over the batch).
    """
    n, c = softmax_pred.shape
    label2d = label.astype(jnp.int32).reshape(n, 1)

    tile_n, tile_c, vmem_limit = _choose_tiles(n, c, softmax_pred.dtype.itemsize)
    num_n = pl.cdiv(n, tile_n)
    num_c = pl.cdiv(c, tile_c)

    kernel = functools.partial(
        _ls_ce_kernel, smoothing=float(smoothing), n_total=n, c_total=c
    )

    partials = pl.pallas_call(
        kernel,
        out_shape=jax.ShapeDtypeStruct((num_n, 1, 1), jnp.float32),
        grid_spec=pltpu.PrefetchScalarGridSpec(
            num_scalar_prefetch=0,
            grid=(num_n, num_c),
            in_specs=[
                pl.BlockSpec((tile_n, tile_c), lambda i, j: (i, j)),
                pl.BlockSpec((tile_n, 1), lambda i, j: (i, 0)),
            ],
            out_specs=pl.BlockSpec((1, 1, 1), lambda i, j: (i, 0, 0)),
        ),
        compiler_params=pltpu.CompilerParams(
            dimension_semantics=("parallel", "arbitrary"),
            vmem_limit_bytes=vmem_limit,
        ),
    )(softmax_pred, label2d)

    # Masked tail rows contribute exactly 0, so divide by the true batch size.
    return jnp.sum(partials) / jnp.float32(n)


def _reference(softmax_pred, label, smoothing):
    num_class = softmax_pred.shape[1]
    one_hot = jax.nn.one_hot(label, num_class, dtype=jnp.float32)
    smoothed = (1.0 - smoothing) * one_hot + smoothing / num_class
    loss = -jnp.log(softmax_pred.astype(jnp.float32)) * smoothed
    return jnp.mean(jnp.sum(loss, axis=-1))


if __name__ == "__main__":
    key = jax.random.PRNGKey(0)
    smoothing = 0.1

    # Main demo shape.
    k1, k2 = jax.random.split(key)
    N, C = 16, 32
    logits = jax.random.normal(k1, (N, C), dtype=jnp.float32)
    softmax_pred = jax.nn.softmax(logits, axis=-1)          # valid probabilities
    label = jax.random.randint(k2, (N,), 0, C, dtype=jnp.int32)

    loss = jax.block_until_ready(
        label_smoothing_cross_entropy_loss(softmax_pred, label, smoothing))
    ref = _reference(softmax_pred, label, smoothing)
    assert jnp.allclose(loss, ref, rtol=1e-5, atol=1e-5), (loss, ref)

    # Ragged shapes: N not a multiple of 8, C not a multiple of 128 — exercises
    # the cdiv grid, multiple parallel batch tiles, and the tail-row masking.
    k3, k4 = jax.random.split(k2)
    N2, C2 = 13, 37
    logits2 = jax.random.normal(k3, (N2, C2), dtype=jnp.float32)
    softmax_pred2 = jax.nn.softmax(logits2, axis=-1)
    label2 = jax.random.randint(k4, (N2,), 0, C2, dtype=jnp.int32)

    loss2 = jax.block_until_ready(
        label_smoothing_cross_entropy_loss(softmax_pred2, label2, smoothing))
    ref2 = _reference(softmax_pred2, label2, smoothing)
    assert jnp.allclose(loss2, ref2, rtol=1e-5, atol=1e-5), (loss2, ref2)

    print("KERNEL_OK")
</pallas_src>

<mosaic_0001>
module attributes {stable_mosaic.version = 11 : i64} {
  func.func @_ls_ce_kernel(%arg0: i32, %arg1: i32, %arg2: memref<16x32xf32, #tpu.memory_space<vmem>>, %arg3: memref<16x1xi32, #tpu.memory_space<vmem>>, %arg4: memref<1x1x1xf32, #tpu.memory_space<vmem>>) attributes {dimension_semantics = [#tpu.dimension_semantics<parallel>, #tpu.dimension_semantics<arbitrary>], iteration_bounds = array<i64: 1, 1>, scalar_prefetch = 0 : i64, scratch_operands = 0 : i64, tpu.core_type = #tpu.core_type<tc>, window_params = [{transform_indices = @transform_0, window_bounds = array<i64: 16, 32>}, {transform_indices = @transform_1, window_bounds = array<i64: 16, 1>}, {transform_indices = @transform_2, window_bounds = array<i64: 1, 1, 1>}]} {
    %c0_i32 = arith.constant 0 : i32
    %0 = arith.cmpi eq, %arg1, %c0_i32 : i32
    %1 = arith.extui %0 : i1 to i32
    %c0_i32_0 = arith.constant 0 : i32
    %2 = arith.cmpi ne, %1, %c0_i32_0 : i32
    scf.if %2 {
      %cst_16 = arith.constant 0.000000e+00 : f32
      %38 = vector.broadcast %cst_16 : f32 to vector<1x1x1xf32>
      %c0_17 = arith.constant 0 : index
      %c0_18 = arith.constant 0 : index
      %c0_19 = arith.constant 0 : index
      %39 = vector.load %arg4[%c0_17, %c0_18, %c0_19] : memref<1x1x1xf32, #tpu.memory_space<vmem>>, vector<1x1x1xf32>
      tpu.vector_store %arg4[%c0_17, %c0_18, %c0_19], %38 {strides = array<i32>} : memref<1x1x1xf32, #tpu.memory_space<vmem>>, vector<1x1x1xf32>,
    } else {
    }
    %c0 = arith.constant 0 : index
    %c0_1 = arith.constant 0 : index
    %3 = vector.load %arg2[%c0, %c0_1] : memref<16x32xf32, #tpu.memory_space<vmem>>, vector<16x32xf32>
    %c0_2 = arith.constant 0 : index
    %c0_3 = arith.constant 0 : index
    %4 = vector.load %arg3[%c0_2, %c0_3] : memref<16x1xi32, #tpu.memory_space<vmem>>, vector<16x1xi32>
    %5 = tpu.iota {dimensions = array<i32: 0>} : vector<16x1xi32>
    %c16_i32 = arith.constant 16 : i32
    %6 = arith.muli %arg0, %c16_i32 : i32
    %7 = vector.broadcast %6 : i32 to vector<16x1xi32>
    %8 = arith.addi %7, %5 : vector<16x1xi32>
    %c16_i32_4 = arith.constant 16 : i32
    %9 = vector.broadcast %c16_i32_4 : i32 to vector<16x1xi32>
    %10 = arith.cmpi slt, %8, %9 : vector<16x1xi32>
    %11 = tpu.iota {dimensions = array<i32: 1>} : vector<16x32xi32>
    %c32_i32 = arith.constant 32 : i32
    %12 = arith.muli %arg1, %c32_i32 : i32
    %13 = vector.broadcast %12 : i32 to vector<16x32xi32>
    %14 = arith.addi %13, %11 : vector<16x32xi32>
    %c32_i32_5 = arith.constant 32 : i32
    %15 = vector.broadcast %c32_i32_5 : i32 to vector<16x32xi32>
    %16 = arith.cmpi slt, %14, %15 : vector<16x32xi32>
    %17 = vector.broadcast %10 : vector<16x1xi1> to vector<16x32xi1>
    %18 = arith.andi %17, %16 : vector<16x32xi1>
    %19 = math.log %3 : vector<16x32xf32>
    %cst = arith.constant 0.000000e+00 : f32
    %20 = vector.broadcast %cst : f32 to vector<16x32xf32>
    %21 = arith.subf %20, %19 : vector<16x32xf32>
    %cst_6 = arith.constant 0.000000e+00 : f32
    %22 = vector.broadcast %cst_6 : f32 to vector<16x32xf32>
    %23 = arith.select %18, %21, %22 : vector<16x32xi1>, vector<16x32xf32>
    %24 = vector.broadcast %4 : vector<16x1xi32> to vector<16x32xi32>
    %25 = arith.cmpi eq, %14, %24 : vector<16x32xi32>
    %cst_7 = arith.constant 0.903124988 : f32
    %cst_8 = arith.constant 3.125000e-03 : f32
    %26 = vector.broadcast %cst_7 : f32 to vector<16x32xf32>
    %27 = vector.broadcast %cst_8 : f32 to vector<16x32xf32>
    %28 = arith.select %25, %26, %27 : vector<16x32xi1>, vector<16x32xf32>
    %c0_9 = arith.constant 0 : index
    %c0_10 = arith.constant 0 : index
    %c0_11 = arith.constant 0 : index
    %29 = vector.load %arg4[%c0_9, %c0_10, %c0_11] : memref<1x1x1xf32, #tpu.memory_space<vmem>>, vector<1x1x1xf32>
    %30 = arith.mulf %23, %28 : vector<16x32xf32>
    %31 = vector.shape_cast %30 : vector<16x32xf32> to vector<1x16x32xf32>
    %cst_12 = arith.constant dense<0.000000e+00> : vector<1xf32>
    %32 = vector.multi_reduction <add>, %31, %cst_12 [1, 2] : vector<1x16x32xf32> to vector<1xf32>
    %33 = vector.shape_cast %32 : vector<1xf32> to vector<1x1x1xf32>
    %34 = vector.extract %33[0, 0, 0] : f32 from vector<1x1x1xf32>
    %35 = vector.broadcast %34 : f32 to vector<1x1x1xf32>
    %36 = arith.addf %29, %35 : vector<1x1x1xf32>
    %c0_13 = arith.constant 0 : index
    %c0_14 = arith.constant 0 : index
    %c0_15 = arith.constant 0 : index
    %37 = vector.load %arg4[%c0_13, %c0_14, %c0_15] : memref<1x1x1xf32, #tpu.memory_space<vmem>>, vector<1x1x1xf32>
    tpu.vector_store %arg4[%c0_13, %c0_14, %c0_15], %36 {strides = array<i32>} : memref<1x1x1xf32, #tpu.memory_space<vmem>>, vector<1x1x1xf32>,
    return
  }
  func.func @transform_0(%arg0: i32, %arg1: i32) -> (i32, i32) {
    %c0_i32 = arith.constant 0 : i32
    return %arg0, %arg1 : i32, i32
  }
  func.func @transform_1(%arg0: i32, %arg1: i32) -> (i32, i32) {
    %c0_i32 = arith.constant 0 : i32
    %c0_i32_0 = arith.constant 0 : i32
    return %arg0, %c0_i32 : i32, i32
  }
  func.func @transform_2(%arg0: i32, %arg1: i32) -> (i32, i32, i32) {
    %c0_i32 = arith.constant 0 : i32
    %c0_i32_0 = arith.constant 0 : i32
    %c0_i32_1 = arith.constant 0 : i32
    return %arg0, %c0_i32, %c0_i32_0 : i32, i32, i32
  }
}

</mosaic_0001>

<bundles_post_ra>
// kernel: tpu_custom_call.1
= control target key start
LH: loop header
LB: loop body
LE: loop exit
PB: predicated region body
PF: predicated region fallthrough
CT: control target
= control target key end

     0   :  { %v130_v1 = vmov 0   ;;  %s175_s0 = inlined_call_operand.vmem [shape: f32[16,32], index: 0, kind: input, shape index: {}]   ;;  %s176_s1 = inlined_call_operand.vmem [shape: s32[16,1], index: 1, kind: input, shape index: {}]   ;;  %s177_s2 = inlined_call_operand.hbm [shape: f32[1,1,1], index: 2, kind: output, shape index: {}]  }
   0x1   :  { %v20_v0 = vld [vmem:[%s176_s1] sm:$0xff]  ;;  %101 = vset.pattern.permute.xlu0 %v130_v1 }
   0x2   :  { %7 = vsyncpa [#allocation3], 0  ;;  %52 = vperm.xlu0 %101, %v20_v0   ;;  %v21_v2 = vld [vmem:[%s176_s1 + $0x8] sm:$0xff]  ;;  %v18_v3 = vld [vmem:[%s175_s0] sm:$0xff]  ;;  %v31_v6 = vlaneseq  ;;  %v131_v15 = vmov 0.003125  }
   0x3   :  { %v19_v4 = vld [vmem:[%s175_s0 + $0x8] sm:$0xff]  ;;  %102 = vlog2.f32 %v18_v3  ;;  %vm64_vm3 = vcmask 261120   ;;  %vm16_vm4 = vcmask 0   ;;  %v132_v25 = vmov 0.0   ;;  %s133_s0 = smov [#allocation2]  }
   0x4   :  { %104 = vlog2.f32 %v19_v4  ;;  %v32_v9 = vand.u32 127, %v31_v6  ;;  %17 = vst.msk [vmem:[#allocation2] sm:$0x1] %vm16_vm4, %v132_v25  ;;  %s87_s1 = sshll.u32 %s133_s0, 4  ;;  %s88_s1 = int_to_ptr.vmem [resolvable:$true] %s87_s1 }
   0x5   :  { %s106_s18 = scalar_lea.vmem %s88_s1, 16  ;;  %s110_s19 = scalar_lea.vmem %s88_s1, 32 }
   0x6   :  { %55 = vperm.xlu0 %101, %v21_v2   ;;  %vm36_vm0 = vcmp.lt.s32.totalorder %v32_v9, 32  ;;  %p107_p0 = scmp.ne.s32.totalorder %s88_s1, %s106_s18  ;;  %p111_p1 = scmp.lt.s32.totalorder %s88_s1, %s88_s1 }
   0x7   :  { %p112_p2 = scmp.lt.s32.totalorder %s110_s19, %s106_s18 }
   0x9   :  { %p113_p3 = por %p112_p2, %p111_p1 }
   0xb   :  { %v61_v33 = vld [vmem:[#allocation2] sm:$0x1]  ;;  %p114_p4 = pnand %p113_p3, %p107_p0 }
   0xd   :  { %v103_v5 = vpop.eup %102 }
   0xe   :  { %v105_v7 = vpop.eup %104  ;;  %v44_v8 = vmul.f32 0.6931472, %v103_v5 }
   0xf   :  { %v46_v10 = vmul.f32 0.6931472, %v105_v7 }
  0x10   :  { %v47_v11 = vsub.f32 0.0, %v44_v8 }
  0x11   :  { %v48_v13 = vsub.f32 0.0, %v46_v10 }
  0x12   :  { %v49_v14 = vsel %vm36_vm0, %v47_v11, 0.0 }
  0x13   :  { %v50_v18 = vsel %vm36_vm0, %v48_v13, 0.0 }
  0x81   :  { %v53_v12 = vpop.permute.xlu0 %52 }
  0x82   :  { %vm57_vm1 = vcmp.eq.s32.totalorder %v32_v9, %v53_v12 }
  0x83   :  { %v59_v16 = vsel %vm57_vm1, 0.903125, %v131_v15 }
  0x84   :  { %v62_v19 = vmul.f32 %v59_v16, %v49_v14 }
  0x85   :  { %v56_v17 = vpop.permute.xlu0 %55 }
  0x86   :  { %vm58_vm2 = vcmp.eq.s32.totalorder %v32_v9, %v56_v17  ;;  %v65_v22 = vsel %vm64_vm3, %v62_v19, 0.0 }
  0x87   :  { %v60_v20 = vsel %vm58_vm2, 0.903125, %v131_v15 }
  0x88   :  { %v63_v21 = vmul.f32 %v60_v20, %v50_v18 }
  0x8a   :  { %v66_v23 = vsel %vm64_vm3, %v63_v21, 0.0 }
  0x8b   :  { %v67_v24 = vadd.f32 %v66_v23, %v65_v22 }
  0x8d   :  { %68 = vadd.xlane.f32.xlu1 %v67_v24 }
 0x11a   :  { %v69_v26 = vpop.xlane.xlu1 %68 }
 0x11b   :  { %v70_v27 = vrot.slane %v69_v26, 4 }
 0x11d   :  { %v71_v28 = vadd.f32 %v70_v27, %v69_v26 }
 0x11f   :  { %v72_v29 = vrot.slane %v71_v28, 2 }
 0x121   :  { %v73_v30 = vadd.f32 %v72_v29, %v71_v28 }
 0x123   :  { %v74_v31 = vrot.slane %v73_v30, 1 }
 0x125   :  { %v75_v32 = vadd.f32 %v74_v31, %v73_v30 }
 0x127   :  { %95 = vpush %v75_v32 }
 0x158   :  { %s96_s17 = spop %95 }
 0x159   :  { %v77_v34 = vstv %s96_s17 }
 0x15a   :  { %v78_v35 = vadd.f32 %v77_v34, %v61_v33 }
 0x15c   :  { %80 = vst.msk [vmem:[#allocation2] sm:$0x1] %vm16_vm4, %v78_v35 }
 0x15d   :  { %117 = shalt.err (!%p114_p4)
}
 0x15e   :  { %s118_s22 = scalar_lea.hbm %s177_s2, 16 }
 0x15f   :  { %p119_p5 = scmp.ne.s32.totalorder %s177_s2, %s118_s22  ;;  %p122_p6 = scmp.lt.u32.totalorder %s118_s22, %s177_s2 }
 0x161   :  { %p124_p7 = pnand %p122_p6, %p119_p5 }
 0x163   :  { %127 = shalt.err (!%p124_p7)
}
 0x164   :  { %90 = dma.vmem_to_hbm [thread:$0]  %s88_s1, 16, %s177_s2, [#allocation3]  }
 0x165   :  { %128 = dma.done.wait [#allocation3], 16  }
 0x166   :  { %129 = vsyncadd [#allocation3], 4294967280 }
 0x167   :  { %94 = vsyncpa [#allocation3], 1 }

</bundles_post_ra>
